<compile_context>
chip_gen: v5e
topology: v5e:2x2
jax: 0.10.0
libtpu: 0.0.40
codegen_flags: <defaults>
</compile_context>

<pallas_src>
import math

import jax
import jax.numpy as jnp
from jax.experimental import pallas as pl
from jax.experimental.pallas import tpu as pltpu


def _drop_path_kernel(scale_ref, x_ref, o_ref):
    # scale_ref: (R, 1) float32 VMEM column -- per-sample 0.0 or 1/keep_prob.
    # x_ref / o_ref: (R, TILE_N) lane-dense VMEM tiles of the activations.
    # Multiply in f32 (exact scale), cast the product back to the activation dtype.
    o_ref[...] = (x_ref[...].astype(jnp.float32) * scale_ref[...]).astype(o_ref.dtype)


def drop_path_pallas(x, drop_prob: float = 0.0, training: bool = False, *,
                     key=None, seed: int = 0):
    """Pallas equivalent of drop_path / DropPath.forward (float activations)."""
    if drop_prob == 0.0 or not training:
        return x                                    # identity path (eval / p=0)
    keep_prob = 1.0 - float(drop_prob)
    if keep_prob <= 0.0:
        # drop_prob == 1.0: every sample is dropped (avoid 0 * inf = NaN).
        return jnp.zeros_like(x)

    B = x.shape[0]
    N = int(math.prod(x.shape[1:])) if x.ndim > 1 else 1

    # Per-sample mask, matching torch: mask = floor(keep_prob + U[0,1)) in {0., 1.}
    if key is None:
        # Fallback only -- callers should thread unique keys per layer / step.
        key = jax.random.PRNGKey(seed)
    u = jax.random.uniform(key, (B,), dtype=jnp.float32)
    mask = jnp.floor(jnp.float32(keep_prob) + u)
    scale = (mask * jnp.float32(1.0 / keep_prob)).reshape(B, 1)   # (B,1) f32

    xr = x.reshape(B, N)                            # contiguous reshape, no copy

    # ---- Block sizing -----------------------------------------------------
    itemsize = jnp.dtype(x.dtype).itemsize
    sub = {1: 32, 2: 16}.get(itemsize, 8)           # sublane packing per dtype
    target_bytes = 2 * 1024 * 1024                  # ~2 MiB per array block

    # Columns per block: full N if it fits the target with the minimum row
    # count, otherwise the largest 128-multiple that does (boundary masked).
    max_cols = max(128, (target_bytes // (min(B, sub) * itemsize)) // 128 * 128)
    tile_n = N if N <= max_cols else max_cols

    # Rows per block: full B when small; otherwise a multiple of the sublane
    # packing sized toward the byte target, while keeping >= 2 batch blocks
    # so the v7x megacore ("parallel" axis) has work for both TensorCores.
    if B <= sub:
        R = B
    else:
        rows_target = (target_bytes // (tile_n * itemsize)) // sub * sub
        half_b = (B // 2) // sub * sub
        R = max(sub, min(rows_target, half_b, B))

    grid = (pl.cdiv(B, R), pl.cdiv(N, tile_n))

    out = pl.pallas_call(
        _drop_path_kernel,
        out_shape=jax.ShapeDtypeStruct((B, N), x.dtype),
        grid=grid,
        in_specs=[
            pl.BlockSpec((R, 1), lambda i, j: (i, 0)),        # per-sample scale column
            pl.BlockSpec((R, tile_n), lambda i, j: (i, j)),   # activations
        ],
        out_specs=pl.BlockSpec((R, tile_n), lambda i, j: (i, j)),
        compiler_params=pltpu.CompilerParams(
            dimension_semantics=("parallel", "parallel"),
        ),
    )(scale, xr)

    return out.reshape(x.shape)
    # TODO(synk): manual-DMA variant (memory_space=pl.ANY + make_async_copy gated
    # by pl.when(scale != 0), zero-fill otherwise) to skip the HBM read for
    # dropped samples (~drop_prob/2 of total traffic on this read+write-bound op).


class DropPath:
    """Mirror of the nn.Module: holds drop_prob; training flag toggled by caller."""

    def __init__(self, drop_prob=None):
        self.drop_prob = 0.0 if drop_prob is None else float(drop_prob)
        self.training = True

    def __call__(self, x, *, key=None, seed: int = 0):
        return drop_path_pallas(x, self.drop_prob, self.training, key=key, seed=seed)


if __name__ == "__main__":
    key = jax.random.PRNGKey(0)
    kx, kdrop = jax.random.split(key)
    x = jax.random.normal(kx, (2, 4, 16, 16), dtype=jnp.float32)  # NCHW

    drop_prob = 0.3
    keep_prob = 1.0 - drop_prob
    mod = DropPath(drop_prob)

    # training path: per-sample stochastic depth applied in the Pallas kernel
    mod.training = True
    y = mod(x, key=kdrop)
    jax.block_until_ready(y)
    assert y.shape == x.shape and y.dtype == x.dtype

    # semantic check: every sample is either fully dropped (0) or scaled by 1/keep_prob
    for b in range(x.shape[0]):
        yb = y[b]
        all_zero = bool(jnp.all(yb == 0.0))
        all_scaled = bool(jnp.allclose(yb, x[b] / keep_prob, atol=1e-5, rtol=1e-5))
        assert all_zero or all_scaled, f"sample {b}: not a valid drop-path output"

    # drop_prob = 1.0 guard: everything dropped, no NaNs
    y_all = drop_path_pallas(x, 1.0, True, key=kdrop)
    jax.block_until_ready(y_all)
    assert bool(jnp.all(y_all == 0.0))

    # eval path: identity
    mod.training = False
    y_eval = mod(x)
    jax.block_until_ready(y_eval)
    assert bool(jnp.array_equal(y_eval, x))

    print("KERNEL_OK")
</pallas_src>

<mosaic_0001>
module attributes {stable_mosaic.version = 11 : i64} {
  func.func @_drop_path_kernel(%arg0: i32, %arg1: i32, %arg2: memref<2x1xf32, #tpu.memory_space<vmem>>, %arg3: memref<2x1024xf32, #tpu.memory_space<vmem>>, %arg4: memref<2x1024xf32, #tpu.memory_space<vmem>>) attributes {dimension_semantics = [#tpu.dimension_semantics<parallel>, #tpu.dimension_semantics<parallel>], iteration_bounds = array<i64: 1, 1>, scalar_prefetch = 0 : i64, scratch_operands = 0 : i64, tpu.core_type = #tpu.core_type<tc>, window_params = [{transform_indices = @transform_0, window_bounds = array<i64: 2, 1>}, {transform_indices = @transform_1, window_bounds = array<i64: 2, 1024>}, {transform_indices = @transform_2, window_bounds = array<i64: 2, 1024>}]} {
    %c0 = arith.constant 0 : index
    %c0_0 = arith.constant 0 : index
    %0 = vector.load %arg3[%c0, %c0_0] : memref<2x1024xf32, #tpu.memory_space<vmem>>, vector<2x1024xf32>
    %c0_1 = arith.constant 0 : index
    %c0_2 = arith.constant 0 : index
    %1 = vector.load %arg2[%c0_1, %c0_2] : memref<2x1xf32, #tpu.memory_space<vmem>>, vector<2x1xf32>
    %2 = vector.broadcast %1 : vector<2x1xf32> to vector<2x1024xf32>
    %3 = arith.mulf %0, %2 : vector<2x1024xf32>
    %c0_3 = arith.constant 0 : index
    %c0_4 = arith.constant 0 : index
    %4 = vector.load %arg4[%c0_3, %c0_4] : memref<2x1024xf32, #tpu.memory_space<vmem>>, vector<2x1024xf32>
    tpu.vector_store %arg4[%c0_3, %c0_4], %3 {strides = array<i32>} : memref<2x1024xf32, #tpu.memory_space<vmem>>, vector<2x1024xf32>,
    return
  }
  func.func @transform_0(%arg0: i32, %arg1: i32) -> (i32, i32) {
    %c0_i32 = arith.constant 0 : i32
    %c0_i32_0 = arith.constant 0 : i32
    return %arg0, %c0_i32 : i32, i32
  }
  func.func @transform_1(%arg0: i32, %arg1: i32) -> (i32, i32) {
    %c0_i32 = arith.constant 0 : i32
    return %arg0, %arg1 : i32, i32
  }
  func.func @transform_2(%arg0: i32, %arg1: i32) -> (i32, i32) {
    %c0_i32 = arith.constant 0 : i32
    return %arg0, %arg1 : i32, i32
  }
}

</mosaic_0001>

<bundles_post_ra>
// kernel: tpu_custom_call.1
= control target key start
LH: loop header
LB: loop body
LE: loop exit
PB: predicated region body
PF: predicated region fallthrough
CT: control target
= control target key end

     0   :  { %7 = vsyncpa [#allocation3], 0  ;;  %s144_s0 = inlined_call_operand.vmem [shape: f32[2,1], index: 0, kind: input, shape index: {}]   ;;  %s145_s1 = inlined_call_operand.hbm [shape: f32[2,1024], index: 1, kind: input, shape index: {}]   ;;  %s146_s2 = inlined_call_operand.hbm [shape: f32[2,1024], index: 2, kind: output, shape index: {}]  }
   0x1   :  { %8 = vsyncpa [#allocation4], 0  ;;  %s16_s11 = sshll.u32 %s145_s1, 4  ;;  %s116_s12 = smov [#allocation2]   ;;  %s17_s11 = int_to_ptr.hbm [resolvable:$true] %s16_s11 }
   0x2   :  { %s18_s13 = sshll.u32 %s116_s12, 4  ;;  %s19_s13 = int_to_ptr.vmem [resolvable:$true] %s18_s13 }
   0x3   :  { %21 = dma.hbm_to_vmem [thread:$0]  %s17_s11, 256, %s19_s13, [#allocation3]  }
   0x4   :  { %112 = dma.done.wait [#allocation3], 256  }
   0x5   :  { %113 = vsyncadd [#allocation3], 4294967040  ;;  %v117_v0 = vmov 0   ;;  %v28_v1 = vld [vmem:[%s144_s0] sm:$0x3]  ;;  %v27_v7 = vld [vmem:[#allocation2 + $0x8] sm:$0xff] }
   0x6   :  { %63 = vset.pattern.permute.xlu0 %v117_v0  ;;  %v118_v2 = vmov 269488144   ;;  %v26_v6 = vld [vmem:[#allocation2] sm:$0xff]  ;;  %s119_s1 = smov [#allocation5]   ;;  %s49_s19 = sshll.u32 %s146_s2, 4  ;;  %s50_s19 = int_to_ptr.hbm [resolvable:$true] %s49_s19 }
   0x7   :  { %31 = vperm.xlu0 %63, %v28_v1   ;;  %v34_v3 = vunpack.c.l.s4 %v118_v2  ;;  %s47_s16 = sshll.u32 %s119_s1, 4  ;;  %s48_s16 = int_to_ptr.vmem [resolvable:$true] %s47_s16 }
   0x9   :  { %v35_v4 = vunpack.c.0.s8 %v34_v3 }
  0x79   :  { %v32_v5 = vpop.permute.xlu0 %31 }
  0x7a   :  { %v36_v8 = vperm.slane %v32_v5, %v35_v4 }
  0x7c   :  { %v38_v9 = vmul.f32 %v36_v8, %v26_v6  ;;  %v39_v10 = vmul.f32 %v36_v8, %v27_v7 }
  0x7e   :  { %40 = vst [vmem:[#allocation5] sm:$0xff] %v38_v9 }
  0x7f   :  { %41 = vst [vmem:[#allocation5 + $0x8] sm:$0xff] %v39_v10 }
  0x80   :  { %52 = dma.vmem_to_hbm [thread:$0]  %s48_s16, 256, %s50_s19, [#allocation4]  }
  0x81   :  { %114 = dma.done.wait [#allocation4], 256  }
  0x82   :  { %115 = vsyncadd [#allocation4], 4294967040 }
  0x83   :  { %57 = vsyncpa [#allocation3], 1 }
  0x84   :  { %58 = vsyncpa [#allocation4], 1 }

</bundles_post_ra>
